<compile_context>
chip_gen: v6e
topology: v6e:2x2x1
jax: 0.10.0
libtpu: 0.0.40
codegen_flags: <defaults>
</compile_context>

<pallas_src>
import functools

import jax
import jax.numpy as jnp
from jax.experimental import pallas as pl
from jax.experimental.pallas import tpu as pltpu

NOISE_DIM = 10
SOC_DIM = 1
IN_DIM = NOISE_DIM + SOC_DIM      # 11
IN_PAD = 16                       # zero-padded K for the first matmul
H1 = 128
H2 = 256
OUTPUT_DIM = 16
BN_EPS = 1e-5

MAX_TILE = 2048                   # batch-tile cap (rows per grid step, multiple of 8)


def _round_up(x, m):
    return (x + m - 1) // m * m


def _cdiv(a, b):
    return -(-a // b)


# ----------------------------------------------------------------------------
# Kernel: three matmul + bias (+ ReLU / tanh) stages, whole batch tile at once.
# ----------------------------------------------------------------------------
def _generator_kernel(compute_dtype,
                      x_ref, w1_ref, b1_ref, w2_ref, b2_ref, w3_ref, b3_ref,
                      o_ref):
    # Layer 1 (BN1 pre-folded into w1/b1): (TB, 16) @ (16, 128).
    h = jnp.dot(x_ref[...], w1_ref[...], preferred_element_type=jnp.float32)
    h = jnp.maximum(h + b1_ref[...], 0.0)

    # Layer 2 (BN2 pre-folded): (TB, 128) @ (128, 256), bf16 operands, f32 acc.
    h = jnp.dot(h.astype(compute_dtype), w2_ref[...],
                preferred_element_type=jnp.float32)
    h = jnp.maximum(h + b2_ref[...], 0.0)

    # Layer 3: (TB, 256) @ (256, 16) + Tanh.
    h = jnp.dot(h.astype(compute_dtype), w3_ref[...],
                preferred_element_type=jnp.float32)
    o_ref[...] = jnp.tanh(h + b3_ref[...])


# ----------------------------------------------------------------------------
# Parameter prep: fold eval-mode BatchNorms into the Linears, pad W1 rows.
# TODO(synk): training-mode BatchNorm (batch statistics) has no equivalent here;
#             this implements PyTorch .eval() forward semantics.
# ----------------------------------------------------------------------------
def fold_params(params, compute_dtype=jnp.bfloat16):
    s1 = params["bn1_g"] * jax.lax.rsqrt(params["bn1_v"] + BN_EPS)      # (1, H1)
    w1 = params["w1"] * s1                                              # (11, H1)
    w1 = jnp.pad(w1, ((0, IN_PAD - IN_DIM), (0, 0)))                    # (16, H1)
    b1 = (params["b1"] - params["bn1_m"]) * s1 + params["bn1_b"]        # (1, H1)

    s2 = params["bn2_g"] * jax.lax.rsqrt(params["bn2_v"] + BN_EPS)      # (1, H2)
    w2 = (params["w2"] * s2).astype(compute_dtype)                      # (H1, H2)
    b2 = (params["b2"] - params["bn2_m"]) * s2 + params["bn2_b"]        # (1, H2)

    w3 = params["w3"].astype(compute_dtype)                             # (H2, OUT)
    b3 = params["b3"]                                                   # (1, OUT)

    return (w1.astype(jnp.float32), b1.astype(jnp.float32),
            w2, b2.astype(jnp.float32),
            w3, b3.astype(jnp.float32))


# ----------------------------------------------------------------------------
# Wrapper: batch tiling / padding, BlockSpecs, pallas_call.
# ----------------------------------------------------------------------------
def generator_forward(noise, soc, folded_params):
    w1, b1, w2, b2, w3, b3 = folded_params
    compute_dtype = w2.dtype
    B = noise.shape[0]

    # Batch tiling: biggest tile up to MAX_TILE; force an even grid of >=2 steps
    # once the batch is big enough so the "parallel" axis shards across v7x TCs.
    b8 = _round_up(B, 8)
    steps = _cdiv(b8, MAX_TILE)
    if b8 >= 16:
        steps = max(steps, 2)
    if steps > 1 and steps % 2 == 1:
        steps += 1
    tb = _round_up(_cdiv(b8, steps), 8)
    b_pad = steps * tb

    # Concatenate noise|soc and zero-pad: rows B -> b_pad, cols 11 -> 16.
    x = jnp.concatenate([noise.astype(jnp.float32),
                         soc.astype(jnp.float32)], axis=1)
    x = jnp.pad(x, ((0, b_pad - B), (0, IN_PAD - IN_DIM)))

    weights = (w1, b1, w2, b2, w3, b3)
    weight_specs = [pl.BlockSpec(w.shape, lambda i: (0, 0)) for w in weights]

    flops = 2 * b_pad * (IN_PAD * H1 + H1 * H2 + H2 * OUTPUT_DIM)
    bytes_accessed = (4 * (x.size + b_pad * OUTPUT_DIM)
                      + sum(int(w.size) * w.dtype.itemsize for w in weights))
    cost = pl.CostEstimate(flops=flops,
                           transcendentals=b_pad * OUTPUT_DIM,
                           bytes_accessed=bytes_accessed)

    out = pl.pallas_call(
        functools.partial(_generator_kernel, compute_dtype),
        out_shape=jax.ShapeDtypeStruct((b_pad, OUTPUT_DIM), jnp.float32),
        grid=(steps,),
        in_specs=[pl.BlockSpec((tb, IN_PAD), lambda i: (i, 0))] + weight_specs,
        out_specs=pl.BlockSpec((tb, OUTPUT_DIM), lambda i: (i, 0)),
        compiler_params=pltpu.CompilerParams(
            dimension_semantics=("parallel",),
            vmem_limit_bytes=32 * 1024 * 1024),
        cost_estimate=cost,
    )(x, *weights)

    return out[:B] if b_pad != B else out


# ----------------------------------------------------------------------------
# Deterministic parameter init and pure-JAX (PyTorch eval-mode) reference.
# ----------------------------------------------------------------------------
def init_params(key):
    ks = jax.random.split(key, 14)

    def nrm(k, shape, scale=0.1):
        return (scale * jax.random.normal(k, shape)).astype(jnp.float32)

    return {
        # Linear weights are (in_features, out_features): forward is x @ W + b.
        "w1": nrm(ks[0], (IN_DIM, H1)),
        "b1": nrm(ks[1], (1, H1)),
        "bn1_g": 1.0 + nrm(ks[2], (1, H1)),
        "bn1_b": nrm(ks[3], (1, H1)),
        "bn1_m": nrm(ks[4], (1, H1)),
        "bn1_v": jnp.abs(1.0 + nrm(ks[5], (1, H1))) + 0.1,
        "w2": nrm(ks[6], (H1, H2)),
        "b2": nrm(ks[7], (1, H2)),
        "bn2_g": 1.0 + nrm(ks[8], (1, H2)),
        "bn2_b": nrm(ks[9], (1, H2)),
        "bn2_m": nrm(ks[10], (1, H2)),
        "bn2_v": jnp.abs(1.0 + nrm(ks[11], (1, H2))) + 0.1,
        "w3": nrm(ks[12], (H2, OUTPUT_DIM)),
        "b3": nrm(ks[13], (1, OUTPUT_DIM)),
    }


def ref_forward(noise, soc, p):
    """Pure-JAX reference mirroring PyTorch eval-mode forward semantics."""
    x = jnp.concatenate([noise, soc], axis=1)
    h = x @ p["w1"] + p["b1"]
    h = (h - p["bn1_m"]) * (p["bn1_g"] / jnp.sqrt(p["bn1_v"] + BN_EPS)) + p["bn1_b"]
    h = jnp.maximum(h, 0.0)
    h = h @ p["w2"] + p["b2"]
    h = (h - p["bn2_m"]) * (p["bn2_g"] / jnp.sqrt(p["bn2_v"] + BN_EPS)) + p["bn2_b"]
    h = jnp.maximum(h, 0.0)
    h = h @ p["w3"] + p["b3"]
    return jnp.tanh(h)


if __name__ == "__main__":
    key = jax.random.PRNGKey(0)
    kn, ksoc, kp = jax.random.split(key, 3)
    params = init_params(kp)

    # --- Small batch, f32 compute path, tight tolerance ---
    B1 = 8
    noise1 = jax.random.normal(kn, (B1, NOISE_DIM), dtype=jnp.float32)
    soc1 = jax.random.normal(ksoc, (B1, SOC_DIM), dtype=jnp.float32)
    ref1 = ref_forward(noise1, soc1, params)

    out_f32 = jax.block_until_ready(
        generator_forward(noise1, soc1, fold_params(params, jnp.float32)))
    assert out_f32.shape == (B1, OUTPUT_DIM)
    if not bool(jnp.allclose(out_f32, ref1, atol=1e-4, rtol=1e-4)):
        raise AssertionError("f32 Pallas kernel output mismatch vs JAX reference")

    # --- Same batch, bf16 MXU operands (default fast path), loose tolerance ---
    out_bf16 = jax.block_until_ready(
        generator_forward(noise1, soc1, fold_params(params)))
    assert out_bf16.shape == (B1, OUTPUT_DIM)
    if not bool(jnp.allclose(out_bf16, ref1, atol=2e-2, rtol=2e-2)):
        raise AssertionError("bf16 Pallas kernel output mismatch vs JAX reference")

    # --- Ragged batch (exercises padding + 2-step parallel grid), f32 path ---
    B2 = 12
    kn2, ks2 = jax.random.split(jax.random.PRNGKey(1), 2)
    noise2 = jax.random.normal(kn2, (B2, NOISE_DIM), dtype=jnp.float32)
    soc2 = jax.random.normal(ks2, (B2, SOC_DIM), dtype=jnp.float32)
    out2 = jax.block_until_ready(
        generator_forward(noise2, soc2, fold_params(params, jnp.float32)))
    assert out2.shape == (B2, OUTPUT_DIM)
    ref2 = ref_forward(noise2, soc2, params)
    if not bool(jnp.allclose(out2, ref2, atol=1e-4, rtol=1e-4)):
        raise AssertionError("padded-batch Pallas kernel output mismatch vs JAX reference")

    print("KERNEL_OK")
</pallas_src>

<mosaic_0001>
module attributes {stable_mosaic.version = 11 : i64} {
  func.func @_generator_kernel(%arg0: i32, %arg1: memref<8x16xf32, #tpu.memory_space<vmem>>, %arg2: memref<16x128xf32, #tpu.memory_space<vmem>>, %arg3: memref<1x128xf32, #tpu.memory_space<vmem>>, %arg4: memref<128x256xf32, #tpu.memory_space<vmem>>, %arg5: memref<1x256xf32, #tpu.memory_space<vmem>>, %arg6: memref<256x16xf32, #tpu.memory_space<vmem>>, %arg7: memref<1x16xf32, #tpu.memory_space<vmem>>, %arg8: memref<8x16xf32, #tpu.memory_space<vmem>>) attributes {dimension_semantics = [#tpu.dimension_semantics<parallel>], iteration_bounds = array<i64: 1>, scalar_prefetch = 0 : i64, scratch_operands = 0 : i64, tpu.core_type = #tpu.core_type<tc>, window_params = [{transform_indices = @transform_0, window_bounds = array<i64: 8, 16>}, {pipeline_mode = #tpu.pipeline_mode<synchronous>, transform_indices = @transform_1, window_bounds = array<i64: 16, 128>}, {pipeline_mode = #tpu.pipeline_mode<synchronous>, transform_indices = @transform_2, window_bounds = array<i64: 1, 128>}, {pipeline_mode = #tpu.pipeline_mode<synchronous>, transform_indices = @transform_3, window_bounds = array<i64: 128, 256>}, {pipeline_mode = #tpu.pipeline_mode<synchronous>, transform_indices = @transform_4, window_bounds = array<i64: 1, 256>}, {pipeline_mode = #tpu.pipeline_mode<synchronous>, transform_indices = @transform_5, window_bounds = array<i64: 256, 16>}, {pipeline_mode = #tpu.pipeline_mode<synchronous>, transform_indices = @transform_6, window_bounds = array<i64: 1, 16>}, {transform_indices = @transform_7, window_bounds = array<i64: 8, 16>}]} {
    %c0 = arith.constant 0 : index
    %c0_0 = arith.constant 0 : index
    %0 = vector.load %arg1[%c0, %c0_0] : memref<8x16xf32, #tpu.memory_space<vmem>>, vector<8x16xf32>
    %c0_1 = arith.constant 0 : index
    %c0_2 = arith.constant 0 : index
    %1 = vector.load %arg2[%c0_1, %c0_2] : memref<16x128xf32, #tpu.memory_space<vmem>>, vector<16x128xf32>
    %cst = arith.constant dense<0.000000e+00> : vector<8x128xf32>
    %2 = tpu.matmul %0, %1, %cst {dimension_numbers = #tpu.dot_dimension_numbers<[1], [0], [0], [1], [0, 0, 1, 1], [], []>} : vector<8x16xf32>, vector<16x128xf32>, vector<8x128xf32> -> vector<8x128xf32>
    %c0_3 = arith.constant 0 : index
    %c0_4 = arith.constant 0 : index
    %3 = vector.load %arg3[%c0_3, %c0_4] : memref<1x128xf32, #tpu.memory_space<vmem>>, vector<1x128xf32>
    %4 = vector.broadcast %3 : vector<1x128xf32> to vector<8x128xf32>
    %5 = arith.addf %2, %4 : vector<8x128xf32>
    %cst_5 = arith.constant 0.000000e+00 : f32
    %6 = vector.broadcast %cst_5 : f32 to vector<8x128xf32>
    %7 = arith.maximumf %5, %6 : vector<8x128xf32>
    %c0_6 = arith.constant 0 : index
    %c0_7 = arith.constant 0 : index
    %8 = vector.load %arg4[%c0_6, %c0_7] : memref<128x256xf32, #tpu.memory_space<vmem>>, vector<128x256xf32>
    %cst_8 = arith.constant dense<0.000000e+00> : vector<8x256xf32>
    %9 = tpu.matmul %7, %8, %cst_8 {dimension_numbers = #tpu.dot_dimension_numbers<[1], [0], [0], [1], [0, 0, 1, 1], [], []>} : vector<8x128xf32>, vector<128x256xf32>, vector<8x256xf32> -> vector<8x256xf32>
    %c0_9 = arith.constant 0 : index
    %c0_10 = arith.constant 0 : index
    %10 = vector.load %arg5[%c0_9, %c0_10] : memref<1x256xf32, #tpu.memory_space<vmem>>, vector<1x256xf32>
    %11 = vector.broadcast %10 : vector<1x256xf32> to vector<8x256xf32>
    %12 = arith.addf %9, %11 : vector<8x256xf32>
    %cst_11 = arith.constant 0.000000e+00 : f32
    %13 = vector.broadcast %cst_11 : f32 to vector<8x256xf32>
    %14 = arith.maximumf %12, %13 : vector<8x256xf32>
    %c0_12 = arith.constant 0 : index
    %c0_13 = arith.constant 0 : index
    %15 = vector.load %arg6[%c0_12, %c0_13] : memref<256x16xf32, #tpu.memory_space<vmem>>, vector<256x16xf32>
    %cst_14 = arith.constant dense<0.000000e+00> : vector<8x16xf32>
    %16 = tpu.matmul %14, %15, %cst_14 {dimension_numbers = #tpu.dot_dimension_numbers<[1], [0], [0], [1], [0, 0, 1, 1], [], []>} : vector<8x256xf32>, vector<256x16xf32>, vector<8x16xf32> -> vector<8x16xf32>
    %c0_15 = arith.constant 0 : index
    %c0_16 = arith.constant 0 : index
    %17 = vector.load %arg7[%c0_15, %c0_16] : memref<1x16xf32, #tpu.memory_space<vmem>>, vector<1x16xf32>
    %18 = vector.broadcast %17 : vector<1x16xf32> to vector<8x16xf32>
    %19 = arith.addf %16, %18 : vector<8x16xf32>
    %20 = math.tanh %19 : vector<8x16xf32>
    %c0_17 = arith.constant 0 : index
    %c0_18 = arith.constant 0 : index
    %21 = vector.load %arg8[%c0_17, %c0_18] : memref<8x16xf32, #tpu.memory_space<vmem>>, vector<8x16xf32>
    tpu.vector_store %arg8[%c0_17, %c0_18], %20 {strides = array<i32>} : memref<8x16xf32, #tpu.memory_space<vmem>>, vector<8x16xf32>,
    return
  }
  func.func @transform_0(%arg0: i32) -> (i32, i32) {
    %c0_i32 = arith.constant 0 : i32
    %c0_i32_0 = arith.constant 0 : i32
    return %arg0, %c0_i32 : i32, i32
  }
  func.func @transform_1(%arg0: i32) -> (i32, i32) {
    %c0_i32 = arith.constant 0 : i32
    %c0_i32_0 = arith.constant 0 : i32
    %c0_i32_1 = arith.constant 0 : i32
    return %c0_i32, %c0_i32_0 : i32, i32
  }
  func.func @transform_2(%arg0: i32) -> (i32, i32) {
    %c0_i32 = arith.constant 0 : i32
    %c0_i32_0 = arith.constant 0 : i32
    %c0_i32_1 = arith.constant 0 : i32
    return %c0_i32, %c0_i32_0 : i32, i32
  }
  func.func @transform_3(%arg0: i32) -> (i32, i32) {
    %c0_i32 = arith.constant 0 : i32
    %c0_i32_0 = arith.constant 0 : i32
    %c0_i32_1 = arith.constant 0 : i32
    return %c0_i32, %c0_i32_0 : i32, i32
  }
  func.func @transform_4(%arg0: i32) -> (i32, i32) {
    %c0_i32 = arith.constant 0 : i32
    %c0_i32_0 = arith.constant 0 : i32
    %c0_i32_1 = arith.constant 0 : i32
    return %c0_i32, %c0_i32_0 : i32, i32
  }
  func.func @transform_5(%arg0: i32) -> (i32, i32) {
    %c0_i32 = arith.constant 0 : i32
    %c0_i32_0 = arith.constant 0 : i32
    %c0_i32_1 = arith.constant 0 : i32
    return %c0_i32, %c0_i32_0 : i32, i32
  }
  func.func @transform_6(%arg0: i32) -> (i32, i32) {
    %c0_i32 = arith.constant 0 : i32
    %c0_i32_0 = arith.constant 0 : i32
    %c0_i32_1 = arith.constant 0 : i32
    return %c0_i32, %c0_i32_0 : i32, i32
  }
  func.func @transform_7(%arg0: i32) -> (i32, i32) {
    %c0_i32 = arith.constant 0 : i32
    %c0_i32_0 = arith.constant 0 : i32
    return %arg0, %c0_i32 : i32, i32
  }
}

</mosaic_0001>

<bundles_post_ra>
// kernel: tpu_custom_call.1
= control target key start
LH: loop header
LB: loop body
LE: loop exit
PB: predicated region body
PF: predicated region fallthrough
CT: control target
= control target key end

     0   :  { %v429_v2 = vmov 0.0   ;;  %vm430_vm0 = vmmov 0   ;;  %vm37_vm1 = vcmask 130048   ;;  %s687_s0 = inlined_call_operand.vmem [shape: f32[8,16], index: 0, kind: input, shape index: {}]   ;;  %s688_s1 = inlined_call_operand.vmem [shape: f32[16,128], index: 1, kind: input, shape index: {}]   ;;  %s689_s2 = inlined_call_operand.vmem [shape: f32[1,128], index: 2, kind: input, shape index: {}]   ;;  %s690_s3 = inlined_call_operand.vmem [shape: f32[128,256], index: 3, kind: input, shape index: {}]   ;;  %s691_s4 = inlined_call_operand.vmem [shape: f32[1,256], index: 4, kind: input, shape index: {}]   ;;  %s692_s5 = inlined_call_operand.vmem [shape: f32[256,16], index: 5, kind: input, shape index: {}]   ;;  %s693_s6 = inlined_call_operand.vmem [shape: f32[1,16], index: 6, kind: input, shape index: {}]   ;;  %s694_s7 = inlined_call_operand.hbm [shape: f32[8,16], index: 7, kind: output, shape index: {}]  }
   0x1   :  { %v29_v0 = vld [vmem:[%s688_s1 + $0x8] sm:$0xff]  ;;  %v28_v1 = vld [vmem:[%s688_s1] sm:$0xff]  ;;  %395 = vmatprep.subr.mxu0 %v429_v2  ;;  %399 = vmatprep.mubr.msk.f32.mxu0 %vm430_vm0, %v429_v2  ;;  %v143_v3 = vld [vmem:[%s690_s3 + $0xf8] sm:$0xff] }
   0x2   :  { %v142_v4 = vld [vmem:[%s690_s3 + $0xf0] sm:$0xff]  ;;  %v141_v5 = vld [vmem:[%s690_s3 + $0xe8] sm:$0xff]  ;;  %396 = vmatpush3.msra.mxu0 %v29_v0  ;;  %v27_v6 = vld [vmem:[%s687_s0] sm:$0xff]  ;;  %156 = vmatprep.subr.mxu1 %v143_v3 }
   0x3   :  { %v140_v7 = vld [vmem:[%s690_s3 + $0xe0] sm:$0xff]  ;;  %397 = vmatprep.subr.mxu0 %v429_v2  ;;  %157 = vmatpush1.msra.mxu1 %v142_v4  ;;  %v139_v8 = vld [vmem:[%s690_s3 + $0xd8] sm:$0xff]  ;;  %v138_v9 = vld [vmem:[%s690_s3 + $0xd0] sm:$0xff] }
   0x4   :  { %398 = vmatpush3.msra.mxu0 %v28_v1  ;;  %158 = vmatprep.subr.mxu1 %v141_v5  ;;  %v137_v10 = vld [vmem:[%s690_s3 + $0xc8] sm:$0xff]  ;;  %v136_v11 = vld [vmem:[%s690_s3 + $0xc0] sm:$0xff]  ;;  %v135_v12 = vld [vmem:[%s690_s3 + $0xb8] sm:$0xff] }
   0x5   :  { %400 = vmatmul.mubr.msk.f32.vlgmr.msra.gmra.mxu0 %vm37_vm1, %v27_v6  ;;  %159 = vmatpush1.msra.mxu1 %v140_v7  ;;  %v134_v13 = vld [vmem:[%s690_s3 + $0xb0] sm:$0xff]  ;;  %v133_v14 = vld [vmem:[%s690_s3 + $0xa8] sm:$0xff]  ;;  %v132_v15 = vld [vmem:[%s690_s3 + $0xa0] sm:$0xff] }
   0x6   :  { %160 = vmatprep.subr.mxu1 %v139_v8  ;;  %220 = vmatprep.mubr.f32.mxu1 %v429_v2 }
   0x7   :  { %161 = vmatpush1.msra.mxu1 %v138_v9 }
   0x8   :  { %162 = vmatprep.subr.mxu1 %v137_v10 }
   0x9   :  { %163 = vmatpush1.msra.mxu1 %v136_v11 }
   0xa   :  { %164 = vmatprep.subr.mxu1 %v135_v12 }
   0xb   :  { %12 = vsyncpa [#allocation3], 0  ;;  %165 = vmatpush1.msra.mxu1 %v134_v13  ;;  %v131_v16 = vld [vmem:[%s690_s3 + $0x98] sm:$0xff]  ;;  %v130_v17 = vld [vmem:[%s690_s3 + $0x90] sm:$0xff]  ;;  %v146_v9 = vlaneseq }
   0xc   :  { %166 = vmatprep.subr.mxu1 %v133_v14  ;;  %v129_v18 = vld [vmem:[%s690_s3 + $0x88] sm:$0xff]  ;;  %v128_v19 = vld [vmem:[%s690_s3 + $0x80] sm:$0xff]  ;;  %v127_v20 = vld [vmem:[%s690_s3 + $0x78] sm:$0xff] }
   0xd   :  { %167 = vmatpush1.msra.mxu1 %v132_v15  ;;  %v126_v21 = vld [vmem:[%s690_s3 + $0x70] sm:$0xff]  ;;  %v125_v22 = vld [vmem:[%s690_s3 + $0x68] sm:$0xff]  ;;  %v124_v23 = vld [vmem:[%s690_s3 + $0x60] sm:$0xff]  ;;  %v147_v10 = vshrl.u32 %v146_v9, 7 }
   0xe   :  { %168 = vmatprep.subr.mxu1 %v131_v16  ;;  %v123_v24 = vld [vmem:[%s690_s3 + $0x58] sm:$0xff]  ;;  %v122_v25 = vld [vmem:[%s690_s3 + $0x50] sm:$0xff]  ;;  %v121_v26 = vld [vmem:[%s690_s3 + $0x48] sm:$0xff] }
   0xf   :  { %169 = vmatpush1.msra.mxu1 %v130_v17  ;;  %v120_v27 = vld [vmem:[%s690_s3 + $0x40] sm:$0xff]  ;;  %v119_v28 = vld [vmem:[%s690_s3 + $0x38] sm:$0xff]  ;;  %v118_v29 = vld [vmem:[%s690_s3 + $0x30] sm:$0xff]  ;;  %v148_v11 = vsub.s32 0, %v147_v10  ;;  %v152_v13 = vsub.s32 1, %v147_v10 }
  0x10   :  { %170 = vmatprep.subr.mxu1 %v129_v18  ;;  %v117_v30 = vld [vmem:[%s690_s3 + $0x28] sm:$0xff]  ;;  %v116_v31 = vld [vmem:[%s690_s3 + $0x20] sm:$0xff]  ;;  %v115_v32 = vld [vmem:[%s690_s3 + $0x18] sm:$0xff] }
  0x11   :  { %171 = vmatpush1.msra.mxu1 %v128_v19  ;;  %v114_v33 = vld [vmem:[%s690_s3 + $0x10] sm:$0xff]  ;;  %v113_v34 = vld [vmem:[%s690_s3 + $0x8] sm:$0xff]  ;;  %v112_v35 = vld [vmem:[%s690_s3] sm:$0xff] }
  0x12   :  { %172 = vmatprep.subr.mxu1 %v127_v20  ;;  %v260_v36 = vld [vmem:[%s692_s5 + $0xf8] sm:$0xff]  ;;  %v259_v38 = vld [vmem:[%s692_s5 + $0xf0] sm:$0xff]  ;;  %v258_v40 = vld [vmem:[%s692_s5 + $0xe8] sm:$0xff] }
  0x13   :  { %173 = vmatpush1.msra.mxu1 %v126_v21  ;;  %v244_v37 = vld [vmem:[%s692_s5 + $0x78] sm:$0xff]  ;;  %360 = vmatprep.subr.mxu0 %v260_v36  ;;  %v243_v39 = vld [vmem:[%s692_s5 + $0x70] sm:$0xff]  ;;  %v242_v41 = vld [vmem:[%s692_s5 + $0x68] sm:$0xff] }
  0x14   :  { %174 = vmatprep.subr.mxu1 %v125_v22  ;;  %361 = vmatpush3.msra.mxu0 %v244_v37  ;;  %v257_v42 = vld [vmem:[%s692_s5 + $0xe0] sm:$0xff]  ;;  %v256_v44 = vld [vmem:[%s692_s5 + $0xd8] sm:$0xff]  ;;  %v255_v46 = vld [vmem:[%s692_s5 + $0xd0] sm:$0xff] }
  0x15   :  { %175 = vmatpush1.msra.mxu1 %v124_v23  ;;  %362 = vmatprep.subr.mxu0 %v259_v38  ;;  %v241_v43 = vld [vmem:[%s692_s5 + $0x60] sm:$0xff]  ;;  %v240_v45 = vld [vmem:[%s692_s5 + $0x58] sm:$0xff]  ;;  %v239_v47 = vld [vmem:[%s692_s5 + $0x50] sm:$0xff] }
  0x16   :  { %176 = vmatprep.subr.mxu1 %v123_v24  ;;  %363 = vmatpush3.msra.mxu0 %v243_v39  ;;  %v254_v48 = vld [vmem:[%s692_s5 + $0xc8] sm:$0xff]  ;;  %v253_v50 = vld [vmem:[%s692_s5 + $0xc0] sm:$0xff]  ;;  %v252_v52 = vld [vmem:[%s692_s5 + $0xb8] sm:$0xff] }
  0x17   :  { %177 = vmatpush1.msra.mxu1 %v122_v25  ;;  %364 = vmatprep.subr.mxu0 %v258_v40  ;;  %v238_v49 = vld [vmem:[%s692_s5 + $0x48] sm:$0xff]  ;;  %v237_v51 = vld [vmem:[%s692_s5 + $0x40] sm:$0xff]  ;;  %v236_v53 = vld [vmem:[%s692_s5 + $0x38] sm:$0xff] }
  0x18   :  { %178 = vmatprep.subr.mxu1 %v121_v26  ;;  %365 = vmatpush3.msra.mxu0 %v242_v41  ;;  %v251_v54 = vld [vmem:[%s692_s5 + $0xb0] sm:$0xff]  ;;  %v250_v56 = vld [vmem:[%s692_s5 + $0xa8] sm:$0xff]  ;;  %v249_v58 = vld [vmem:[%s692_s5 + $0xa0] sm:$0xff] }
  0x19   :  { %179 = vmatpush1.msra.mxu1 %v120_v27  ;;  %366 = vmatprep.subr.mxu0 %v257_v42  ;;  %v235_v55 = vld [vmem:[%s692_s5 + $0x30] sm:$0xff]  ;;  %v234_v57 = vld [vmem:[%s692_s5 + $0x28] sm:$0xff]  ;;  %v233_v59 = vld [vmem:[%s692_s5 + $0x20] sm:$0xff] }
  0x1a   :  { %180 = vmatprep.subr.mxu1 %v119_v28  ;;  %367 = vmatpush3.msra.mxu0 %v241_v43  ;;  %v354_v60 = vld [vmem:[%s689_s2] ss:$0 sm:$0xff]  ;;  %v248_v1 = vld [vmem:[%s692_s5 + $0x98] sm:$0xff]  ;;  %v247_v3 = vld [vmem:[%s692_s5 + $0x90] sm:$0xff] }
  0x1b   :  { %181 = vmatpush1.msra.mxu1 %v118_v29  ;;  %368 = vmatprep.subr.mxu0 %v256_v44  ;;  %v232_v2 = vld [vmem:[%s692_s5 + $0x18] sm:$0xff]  ;;  %v231_v4 = vld [vmem:[%s692_s5 + $0x10] sm:$0xff]  ;;  %v246_v5 = vld [vmem:[%s692_s5 + $0x88] sm:$0xff] }
  0x1c   :  { %182 = vmatprep.subr.mxu1 %v117_v30  ;;  %369 = vmatpush3.msra.mxu0 %v240_v45  ;;  %v230_v6 = vld [vmem:[%s692_s5 + $0x8] sm:$0xff]  ;;  %v245_v7 = vld [vmem:[%s692_s5 + $0x80] sm:$0xff] }
  0x1d   :  { %183 = vmatpush1.msra.mxu1 %v116_v31  ;;  %370 = vmatprep.subr.mxu0 %v255_v46  ;;  %v229_v8 = vld [vmem:[%s692_s5] sm:$0xff] }
  0x1e   :  { %184 = vmatprep.subr.mxu1 %v115_v32  ;;  %371 = vmatpush3.msra.mxu0 %v239_v47  ;;  %v144_v12 = vld [vmem:[%s691_s4] sm:$0x3]  ;;  %s431_s4 = smov [#allocation2]  }
  0x1f   :  { %185 = vmatpush1.msra.mxu1 %v114_v33  ;;  %372 = vmatprep.subr.mxu0 %v254_v48  ;;  %v149_v14 = vrot.slane %v144_v12, %v148_v11  ;;  %v153_v15 = vrot.slane %v144_v12, %v152_v13  ;;  %v356_v23 = vld [vmem:[%s693_s6] ss:$0 sm:$0xff]  ;;  %s346_s11 = sshll.u32 %s431_s4, 4  ;;  %s347_s11 = int_to_ptr.vmem [resolvable:$true] %s346_s11 }
  0x20   :  { %186 = vmatprep.subr.mxu1 %v113_v34  ;;  %373 = vmatpush3.msra.mxu0 %v238_v49  ;;  %s407_s12 = scalar_lea.vmem %s347_s11, 128  ;;  %p412_p1 = scmp.lt.s32.totalorder %s347_s11, %s347_s11 }
  0x21   :  { %187 = vmatpush1.msra.mxu1 %v112_v35  ;;  %374 = vmatprep.subr.mxu0 %v253_v50  ;;  %p408_p0 = scmp.ne.s32.totalorder %s347_s11, %s407_s12  ;;  %p413_p2 = scmp.lt.s32.totalorder %s407_s12, %s407_s12 }
  0x22   :  { %375 = vmatpush3.msra.mxu0 %v237_v51 }
  0x23   :  { %376 = vmatprep.subr.mxu0 %v252_v52  ;;  %p414_p3 = por %p413_p2, %p412_p1 }
  0x24   :  { %377 = vmatpush3.msra.mxu0 %v236_v53 }
  0x25   :  { %378 = vmatprep.subr.mxu0 %v251_v54  ;;  %p415_p4 = pnand %p414_p3, %p408_p0 }
  0x26   :  { %379 = vmatpush3.msra.mxu0 %v235_v55 }
  0x27   :  { %380 = vmatprep.subr.mxu0 %v250_v56 }
  0x28   :  { %381 = vmatpush3.msra.mxu0 %v234_v57 }
  0x29   :  { %382 = vmatprep.subr.mxu0 %v249_v58 }
  0x2a   :  { %383 = vmatpush3.msra.mxu0 %v233_v59 }
  0x2b   :  { %384 = vmatprep.subr.mxu0 %v248_v1 }
  0x2c   :  { %385 = vmatpush3.msra.mxu0 %v232_v2 }
  0x2d   :  { %386 = vmatprep.subr.mxu0 %v247_v3 }
  0x2e   :  { %387 = vmatpush3.msra.mxu0 %v231_v4 }
  0x2f   :  { %388 = vmatprep.subr.mxu0 %v246_v5 }
  0x30   :  { %389 = vmatpush3.msra.mxu0 %v230_v6 }
  0x31   :  { %390 = vmatprep.subr.mxu0 %v245_v7 }
  0x32   :  { %391 = vmatpush3.msra.mxu0 %v229_v8 }
  0xc5   :  { %v107_v61 = vpop.f32.mrf.mxu0 }
  0xc6   :  { %v108_v62 = vadd.f32 %v354_v60, %v107_v61 }
  0xc7   :  { %v401_v63 = vpop.f32.mrf.mxu0 }
  0xc8   :  { %v111_v0 = vmax.f32 %v108_v62, 0.0 }
  0xca   :  { %221 = vmatmul.mubr.f32.vlgmr.msra.gmra.mxu1 %v111_v0 }
 0x18a   :  { %v222_v16 = vpop.f32.mrf.mxu1 }
 0x18b   :  { %v223_v17 = vadd.f32 %v222_v16, %v149_v14 }
 0x18c   :  { %v224_v18 = vpop.f32.mrf.mxu1 }
 0x18d   :  { %v225_v19 = vadd.f32 %v224_v18, %v153_v15  ;;  %v227_v21 = vmax.f32 %v223_v17, 0.0 }
 0x18f   :  { %v228_v20 = vmax.f32 %v225_v19, 0.0 }
 0x191   :  { %332 = vmatprep.mubr.f32.mxu0 %v228_v20 }
 0x192   :  { %333 = vmatmul.mubr.f32.vlgmr.msra.gmra.mxu0 %v227_v21 }
 0x252   :  { %v392_v22 = vpop.f32.mrf.mxu0 }
 0x254   :  { %v393_v24 = vpop.f32.mrf.mxu0 }
 0x255   :  { %v394_v25 = vadd.f32 %v393_v24, %v392_v22 }
 0x257   :  { %v335_v26 = vadd.f32 %v394_v25, %v356_v23 }
 0x259   :  { %405 = vtanh.f32 %v335_v26 }
 0x266   :  { %v406_v27 = vpop.eup %405 }
 0x267   :  { %339 = vst.msk [vmem:[#allocation2] sm:$0xff] %vm37_vm1, %v406_v27 }
 0x268   :  { %418 = shalt.err (!%p415_p4)
}
 0x269   :  { %349 = dma.vmem_to_hbm [thread:$0]  %s347_s11, 128, %s694_s7, [#allocation3]  }
 0x26a   :  { %427 = dma.done.wait [#allocation3], 128  }
 0x26b   :  { %428 = vsyncadd [#allocation3], 4294967168 }
 0x26c   :  { %353 = vsyncpa [#allocation3], 1 }

</bundles_post_ra>
